<compile_context>
chip_gen: v6e
topology: v6e:2x2x1
jax: 0.10.0
libtpu: 0.0.40
codegen_flags: <defaults>
</compile_context>

<pallas_src>
import jax
import jax.numpy as jnp
import numpy as np
from jax.experimental import pallas as pl
from jax.experimental.pallas import tpu as pltpu


# ----------------------------- kernel 1: token stage --------------------------
# Channel-major layout: rows = features/channels, columns = tokens of one batch.
def _token_kernel(pm_ref, w1_ref, b1_ref, g_ref, be_ref, w2_ref, b2_ref,
                  prn_ref, wcf_ref, o_ref):
    x = pm_ref[...].astype(jnp.bfloat16)                       # (PP, TN)

    # mlp1: (Dh, PP) @ (PP, TN), f32 accumulate
    h = jnp.dot(w1_ref[...], x, preferred_element_type=jnp.float32) + b1_ref[...]

    # LayerNorm over features (axis 0), eps = 1e-5, biased variance (f32)
    mu = jnp.mean(h, axis=0, keepdims=True)
    var = jnp.mean(jnp.square(h - mu), axis=0, keepdims=True)
    h = (h - mu) * jax.lax.rsqrt(var + 1e-5) * g_ref[...] + be_ref[...]

    # mlp2: (D, Dh) @ (Dh, TN)
    z = jnp.dot(w2_ref[...], h.astype(jnp.bfloat16),
                preferred_element_type=jnp.float32) + b2_ref[...]

    # softmax over channels (axis 0) + elementwise gate; reductions stay f32
    e = jnp.exp(z - jnp.max(z, axis=0, keepdims=True))
    attn = e * pl.reciprocal(jnp.sum(e, axis=0, keepdims=True), approx=True)
    lo = z * attn                                              # (D, TN) f32

    # cosine-similarity mask against the pre-normalized prompt (f32 reductions).
    # F.normalize: divide by max(||lo||, 1e-12) == rsqrt(max(||lo||^2, 1e-24))
    inv_n = jax.lax.rsqrt(jnp.maximum(jnp.sum(lo * lo, axis=0, keepdims=True), 1e-24))
    cos = jnp.sum(lo * prn_ref[...], axis=0, keepdims=True) * inv_n
    mask = jnp.clip(cos, 0.0, 1.0)

    # gate multiply in bf16 (also the operand dtype of the final matmul)
    gated = lo.astype(jnp.bfloat16) * mask.astype(jnp.bfloat16)

    # fused top_down_transform + 1x1-conv weight: (D, D) @ (D, TN); bf16 store
    o_ref[...] = jnp.dot(wcf_ref[...], gated,
                         preferred_element_type=jnp.float32).astype(o_ref.dtype)


# ------------------- kernel 2: separable upsample + conv bias -----------------
# v_ref is the patch grid in (D, Wp, Hp) order (wp-major tokens), bf16, with the
# conv/top-down channel transform already applied by kernel 1.
def _upsample_kernel(v_ref, ahT_ref, awT_ref, bc_ref, o_ref):
    Dd, Wp_, Hp_ = v_ref.shape
    H_ = ahT_ref.shape[1]
    W_ = awT_ref.shape[1]

    v = v_ref[...]                                             # (D, Wp, Hp) bf16
    # height upsample: one 2-D MXU matmul, no D-batching:
    #   (D*Wp, Hp) @ (Hp, H) -> (D, Wp, H)
    u = jnp.dot(v.reshape(Dd * Wp_, Hp_), ahT_ref[...],
                preferred_element_type=jnp.float32)
    # single in-kernel relayout: (D, Wp, H) -> (D, H, Wp) (smallest place to do it)
    u = jnp.swapaxes(u.reshape(Dd, Wp_, H_), 1, 2).astype(jnp.bfloat16)
    # width upsample: one 2-D MXU matmul: (D*H, Wp) @ (Wp, W) -> (D, H, W)
    t = jnp.dot(u.reshape(Dd * H_, Wp_), awT_ref[...],
                preferred_element_type=jnp.float32)
    # NOTE: at real sizes ensure W is a multiple of 128 so this store is lane-dense.
    o_ref[...] = t.reshape(Dd, H_, W_) + bc_ref[...]           # + conv bias (D,1,1)


# ------------------------------ wrapper helpers --------------------------------
def _interp_matrix(out_size, in_size):
    """Row-interpolation matrix matching F.interpolate(bilinear, align_corners=False)."""
    scale = in_size / out_size
    dst = np.arange(out_size, dtype=np.float64)
    src = np.maximum((dst + 0.5) * scale - 0.5, 0.0)
    i0 = np.minimum(np.floor(src).astype(np.int64), in_size - 1)
    i1 = np.minimum(i0 + 1, in_size - 1)
    lam = np.clip(src - i0, 0.0, 1.0)
    A = np.zeros((out_size, in_size), dtype=np.float32)
    A[np.arange(out_size), i0] += (1.0 - lam).astype(np.float32)
    A[np.arange(out_size), i1] += lam.astype(np.float32)
    return A


def _patch_means(x, P):
    """x.permute(0,2,3,1).unfold(1,P,P).unfold(2,P,P).reshape(B,-1,P*P,C).mean(-1).

    Torch's .reshape(...) re-interprets each contiguous (C, P, P) patch block as
    (P*P, C) in row-major order; jnp's row-major reshape reproduces that exactly.
    """
    # TODO(synk): add an independent torch-parity test for this unfold/reshape glue.
    B, C, H, W = x.shape
    Hp, Wp = H // P, W // P
    xp = jnp.transpose(x, (0, 2, 3, 1))                                   # (B,H,W,C)
    u = xp.reshape(B, Hp, P, Wp, P, C).transpose(0, 1, 3, 5, 2, 4)        # (B,Hp,Wp,C,P,P)
    lp = u.reshape(B, Hp * Wp, P * P, C)
    return jnp.mean(lp, axis=-1)                                          # (B,N,PP)


def _pick_token_tile(n):
    # prefer >=256-wide tiles for the 256-wide v6e/v7x MXU; fall back to the full
    # token dim at toy / awkward sizes (legal: block dim == full array dim).
    for c in (512, 384, 256, 128):
        if n % c == 0:
            return c
    return n


# ---------------------------------- wrapper ------------------------------------
def local_global_attention(x, params, patch_size, output_dim):
    """params in PyTorch layouts:
       w1 (Dh, PP), b1 (Dh,), gamma (Dh,), beta (Dh,), w2 (D, Dh), b2 (D,),
       prompt (D,), tdt (D, D), conv_w (D, D) [out, in], conv_b (D,)."""
    w1, b1, gamma, beta, w2, b2, prompt, tdt, conv_w, conv_b = params
    B, C, H, W = x.shape
    P, D = patch_size, output_dim
    Dh, PP = D // 2, P * P
    Hp, Wp = H // P, W // P
    N = Hp * Wp
    TN = _pick_token_tile(N)
    assert H % P == 0 and W % P == 0 and N % TN == 0 and D % 2 == 0

    # ---- wrapper-side glue (pure layout / constant precompute) ----
    pm = _patch_means(x, P).astype(jnp.float32)            # (B, N, PP), n = hp*Wp + wp
    # channel-major + wp-major token order in ONE small transpose over pm
    # (folds the old `.T` into the same pass): (B, PP, N'), n' = wp*Hp + hp.
    pm_cm = pm.reshape(B, Hp, Wp, PP).transpose(0, 3, 2, 1).reshape(B, PP, N)

    # fused (top_down_transform -> 1x1 conv) weight, channel-major:
    #   out = up(lo @ tdt) @ conv_w.T + b = up(lo @ (tdt @ conv_w.T)) + b
    #   channel-major: wcf_cm = (tdt @ conv_w.T).T = conv_w @ tdt.T
    wcf_cm = (conv_w @ tdt.T).astype(jnp.bfloat16)         # (D, D)

    # pre-normalized prompt (grid-invariant -> hoisted out of the kernel)
    prn = (prompt / jnp.maximum(jnp.linalg.norm(prompt), 1e-12)).reshape(D, 1)
    prn = prn.astype(jnp.float32)

    w1_cm = w1.astype(jnp.bfloat16)                        # (Dh, PP)
    w2_cm = w2.astype(jnp.bfloat16)                        # (D, Dh)
    b1_c = b1.reshape(Dh, 1).astype(jnp.float32)
    b2_c = b2.reshape(D, 1).astype(jnp.float32)
    gm_c = gamma.reshape(Dh, 1).astype(jnp.float32)
    bt_c = beta.reshape(Dh, 1).astype(jnp.float32)

    # separable bilinear-upsample matrices, plain 2-D (NOT broadcast over D)
    ahT = jnp.asarray(_interp_matrix(H, Hp)).T.astype(jnp.bfloat16)   # (Hp, H)
    awT = jnp.asarray(_interp_matrix(W, Wp)).T.astype(jnp.bfloat16)   # (Wp, W)
    bc3 = conv_b.reshape(D, 1, 1).astype(jnp.float32)

    # ---- kernel 1: token stage, grid = (batch, token tiles), all parallel ----
    def const_spec2(arr):
        nd = arr.ndim
        return pl.BlockSpec(arr.shape, lambda b, j, _nd=nd: (0,) * _nd)

    v_cm = pl.pallas_call(
        _token_kernel,
        # bf16 intermediate: kernel 2 consumed bf16 anyway; halves HBM traffic.
        out_shape=jax.ShapeDtypeStruct((B, D, N), jnp.bfloat16),
        grid=(B, N // TN),
        in_specs=[
            pl.BlockSpec((None, PP, TN), lambda b, j: (b, 0, j)),
            const_spec2(w1_cm), const_spec2(b1_c), const_spec2(gm_c),
            const_spec2(bt_c), const_spec2(w2_cm), const_spec2(b2_c),
            const_spec2(prn), const_spec2(wcf_cm),
        ],
        # direct (B, D, N) write: no XLA transpose pass over the intermediate.
        out_specs=pl.BlockSpec((None, D, TN), lambda b, j: (b, 0, j)),
        compiler_params=pltpu.CompilerParams(
            dimension_semantics=("parallel", "parallel")),
    )(pm_cm, w1_cm, b1_c, gm_c, bt_c, w2_cm, b2_c, prn, wcf_cm)

    # (B, D, N') -> (B, D, Wp, Hp): splits only the minor dim (thin XLA glue).
    v4 = v_cm.reshape(B, D, Wp, Hp)

    # ---- kernel 2: separable upsample + conv bias, one parallel step/batch ----
    # TODO(synk): at real H*W*D, additionally tile the grid over H (slice Ah via
    # its BlockSpec) and raise vmem_limit_bytes per-generation.
    def const_spec1(arr):
        nd = arr.ndim
        return pl.BlockSpec(arr.shape, lambda b, _nd=nd: (0,) * _nd)

    out = pl.pallas_call(
        _upsample_kernel,
        out_shape=jax.ShapeDtypeStruct((B, D, H, W), jnp.float32),
        grid=(B,),
        in_specs=[
            pl.BlockSpec((None, D, Wp, Hp), lambda b: (b, 0, 0, 0)),
            const_spec1(ahT), const_spec1(awT), const_spec1(bc3),
        ],
        out_specs=pl.BlockSpec((None, D, H, W), lambda b: (b, 0, 0, 0)),
        compiler_params=pltpu.CompilerParams(dimension_semantics=("parallel",)),
    )(v4, ahT, awT, bc3)

    return out                                             # NCHW (B, D, H, W)


# ------------------------------ pure-JAX reference ------------------------------
def reference_forward(x, params, Ah, Aw, patch_size, output_dim):
    w1, b1, gamma, beta, w2, b2, prompt, tdt, conv_w, conv_b = params
    B, C, H, W = x.shape
    P, D = patch_size, output_dim
    Hp, Wp = H // P, W // P

    lp = _patch_means(x, P)                                # (B, N, PP)
    h = lp @ w1.T + b1
    mu = h.mean(-1, keepdims=True)
    var = ((h - mu) ** 2).mean(-1, keepdims=True)
    h = (h - mu) / jnp.sqrt(var + 1e-5) * gamma + beta
    z = h @ w2.T + b2
    attn = jax.nn.softmax(z, axis=-1)
    lo = z * attn
    lo_n = lo / jnp.maximum(jnp.linalg.norm(lo, axis=-1, keepdims=True), 1e-12)
    pr_n = prompt / jnp.maximum(jnp.linalg.norm(prompt), 1e-12)
    cos = jnp.sum(lo_n * pr_n, axis=-1, keepdims=True)
    lo = lo * jnp.clip(cos, 0.0, 1.0)
    lo = lo @ tdt                                          # (B, N, D)
    g = lo.reshape(B, Hp, Wp, D)
    t = jnp.einsum('hp,bpqd->bhqd', Ah, g)
    u = jnp.einsum('wq,bhqd->bhwd', Aw, t)
    out = u @ conv_w.T + conv_b                            # (B, H, W, D)
    return out.transpose(0, 3, 1, 2)


# ------------------------------------ main --------------------------------------
if __name__ == "__main__":
    # Non-square spatial dims (H != W) so any hp/wp ordering bug is caught by the
    # self-test; N = (H/P)*(W/P) = 128 -> lane-dense token tiles.
    B, C, H, W = 2, 4, 16, 32
    P, D = 2, 32
    Dh, PP = D // 2, P * P
    Hp, Wp = H // P, W // P

    key = jax.random.PRNGKey(0)
    ks = jax.random.split(key, 11)

    x = jax.random.normal(ks[0], (B, C, H, W), jnp.float32)

    # PyTorch-layout parameters (weights [out, in]); LayerNorm affine perturbed so
    # it is exercised, tdt non-identity so the tdt@conv fusion is validated.
    w1 = jax.random.normal(ks[1], (Dh, PP), jnp.float32) * 0.2
    b1 = jax.random.normal(ks[2], (Dh,), jnp.float32) * 0.1
    gamma = 1.0 + 0.1 * jax.random.normal(ks[3], (Dh,), jnp.float32)
    beta = 0.1 * jax.random.normal(ks[4], (Dh,), jnp.float32)
    w2 = jax.random.normal(ks[5], (D, Dh), jnp.float32) * 0.2
    b2 = jax.random.normal(ks[6], (D,), jnp.float32) * 0.1
    prompt = jax.random.normal(ks[7], (D,), jnp.float32)
    tdt = jnp.eye(D, dtype=jnp.float32) + 0.1 * jax.random.normal(ks[8], (D, D), jnp.float32)
    conv_w = jax.random.normal(ks[9], (D, D), jnp.float32) * 0.2    # Conv2d 1x1 [out, in]
    conv_b = jax.random.normal(ks[10], (D,), jnp.float32) * 0.1

    params = (w1, b1, gamma, beta, w2, b2, prompt, tdt, conv_w, conv_b)

    out = local_global_attention(x, params, patch_size=P, output_dim=D)
    out = jax.block_until_ready(out)
    assert out.shape == (B, D, H, W)

    Ah = jnp.asarray(_interp_matrix(H, Hp))
    Aw = jnp.asarray(_interp_matrix(W, Wp))
    ref = jax.block_until_ready(reference_forward(x, params, Ah, Aw, P, D))
    # bf16 MXU operands with f32 accumulation -> compare at 2e-2 tolerance.
    np.testing.assert_allclose(np.asarray(out), np.asarray(ref), rtol=2e-2, atol=2e-2)

    print("KERNEL_OK")
</pallas_src>

<mosaic_0001>
module attributes {stable_mosaic.version = 11 : i64} {
  func.func @_token_kernel(%arg0: i32, %arg1: i32, %arg2: memref<1x4x128xf32, #tpu.memory_space<vmem>>, %arg3: memref<16x4xbf16, #tpu.memory_space<vmem>>, %arg4: memref<16x1xf32, #tpu.memory_space<vmem>>, %arg5: memref<16x1xf32, #tpu.memory_space<vmem>>, %arg6: memref<16x1xf32, #tpu.memory_space<vmem>>, %arg7: memref<32x16xbf16, #tpu.memory_space<vmem>>, %arg8: memref<32x1xf32, #tpu.memory_space<vmem>>, %arg9: memref<32x1xf32, #tpu.memory_space<vmem>>, %arg10: memref<32x32xbf16, #tpu.memory_space<vmem>>, %arg11: memref<1x32x128xbf16, #tpu.memory_space<vmem>>) attributes {dimension_semantics = [#tpu.dimension_semantics<parallel>, #tpu.dimension_semantics<parallel>], iteration_bounds = array<i64: 2, 1>, scalar_prefetch = 0 : i64, scratch_operands = 0 : i64, tpu.core_type = #tpu.core_type<tc>, window_params = [{transform_indices = @transform_0, window_bounds = array<i64: 1, 4, 128>}, {pipeline_mode = #tpu.pipeline_mode<synchronous>, transform_indices = @transform_1, window_bounds = array<i64: 16, 4>}, {pipeline_mode = #tpu.pipeline_mode<synchronous>, transform_indices = @transform_2, window_bounds = array<i64: 16, 1>}, {pipeline_mode = #tpu.pipeline_mode<synchronous>, transform_indices = @transform_3, window_bounds = array<i64: 16, 1>}, {pipeline_mode = #tpu.pipeline_mode<synchronous>, transform_indices = @transform_4, window_bounds = array<i64: 16, 1>}, {pipeline_mode = #tpu.pipeline_mode<synchronous>, transform_indices = @transform_5, window_bounds = array<i64: 32, 16>}, {pipeline_mode = #tpu.pipeline_mode<synchronous>, transform_indices = @transform_6, window_bounds = array<i64: 32, 1>}, {pipeline_mode = #tpu.pipeline_mode<synchronous>, transform_indices = @transform_7, window_bounds = array<i64: 32, 1>}, {pipeline_mode = #tpu.pipeline_mode<synchronous>, transform_indices = @transform_8, window_bounds = array<i64: 32, 32>}, {transform_indices = @transform_9, window_bounds = array<i64: 1, 32, 128>}]} {
    %c0 = arith.constant 0 : index
    %c0_0 = arith.constant 0 : index
    %c0_1 = arith.constant 0 : index
    %0 = vector.load %arg2[%c0, %c0_0, %c0_1] : memref<1x4x128xf32, #tpu.memory_space<vmem>>, vector<1x4x128xf32>
    %1 = vector.shape_cast %0 : vector<1x4x128xf32> to vector<4x128xf32>
    %2 = arith.truncf %1 : vector<4x128xf32> to vector<4x128xbf16>
    %c0_2 = arith.constant 0 : index
    %c0_3 = arith.constant 0 : index
    %3 = vector.load %arg3[%c0_2, %c0_3] : memref<16x4xbf16, #tpu.memory_space<vmem>>, vector<16x4xbf16>
    %cst = arith.constant dense<0.000000e+00> : vector<16x128xf32>
    %4 = tpu.matmul %3, %2, %cst {dimension_numbers = #tpu.dot_dimension_numbers<[1], [0], [0], [1], [0, 0, 1, 1], [], []>} : vector<16x4xbf16>, vector<4x128xbf16>, vector<16x128xf32> -> vector<16x128xf32>
    %c0_4 = arith.constant 0 : index
    %c0_5 = arith.constant 0 : index
    %5 = vector.load %arg4[%c0_4, %c0_5] : memref<16x1xf32, #tpu.memory_space<vmem>>, vector<16x1xf32>
    %6 = vector.broadcast %5 : vector<16x1xf32> to vector<16x128xf32>
    %7 = arith.addf %4, %6 : vector<16x128xf32>
    %cst_6 = arith.constant dense<0.000000e+00> : vector<128xf32>
    %8 = vector.multi_reduction <add>, %7, %cst_6 [0] : vector<16x128xf32> to vector<128xf32>
    %9 = vector.shape_cast %8 : vector<128xf32> to vector<1x128xf32>
    %cst_7 = arith.constant 1.600000e+01 : f32
    %10 = vector.broadcast %cst_7 : f32 to vector<1x128xf32>
    %11 = arith.divf %9, %10 : vector<1x128xf32>
    %12 = vector.broadcast %11 : vector<1x128xf32> to vector<16x128xf32>
    %13 = arith.subf %7, %12 : vector<16x128xf32>
    %14 = arith.mulf %13, %13 : vector<16x128xf32>
    %cst_8 = arith.constant dense<0.000000e+00> : vector<128xf32>
    %15 = vector.multi_reduction <add>, %14, %cst_8 [0] : vector<16x128xf32> to vector<128xf32>
    %16 = vector.shape_cast %15 : vector<128xf32> to vector<1x128xf32>
    %cst_9 = arith.constant 1.600000e+01 : f32
    %17 = vector.broadcast %cst_9 : f32 to vector<1x128xf32>
    %18 = arith.divf %16, %17 : vector<1x128xf32>
    %19 = vector.broadcast %11 : vector<1x128xf32> to vector<16x128xf32>
    %20 = arith.subf %7, %19 : vector<16x128xf32>
    %cst_10 = arith.constant 9.99999974E-6 : f32
    %21 = vector.broadcast %cst_10 : f32 to vector<1x128xf32>
    %22 = arith.addf %18, %21 : vector<1x128xf32>
    %23 = math.rsqrt %22 : vector<1x128xf32>
    %24 = vector.broadcast %23 : vector<1x128xf32> to vector<16x128xf32>
    %25 = arith.mulf %20, %24 : vector<16x128xf32>
    %c0_11 = arith.constant 0 : index
    %c0_12 = arith.constant 0 : index
    %26 = vector.load %arg5[%c0_11, %c0_12] : memref<16x1xf32, #tpu.memory_space<vmem>>, vector<16x1xf32>
    %27 = vector.broadcast %26 : vector<16x1xf32> to vector<16x128xf32>
    %28 = arith.mulf %25, %27 : vector<16x128xf32>
    %c0_13 = arith.constant 0 : index
    %c0_14 = arith.constant 0 : index
    %29 = vector.load %arg6[%c0_13, %c0_14] : memref<16x1xf32, #tpu.memory_space<vmem>>, vector<16x1xf32>
    %30 = vector.broadcast %29 : vector<16x1xf32> to vector<16x128xf32>
    %31 = arith.addf %28, %30 : vector<16x128xf32>
    %c0_15 = arith.constant 0 : index
    %c0_16 = arith.constant 0 : index
    %32 = vector.load %arg7[%c0_15, %c0_16] : memref<32x16xbf16, #tpu.memory_space<vmem>>, vector<32x16xbf16>
    %33 = arith.truncf %31 : vector<16x128xf32> to vector<16x128xbf16>
    %cst_17 = arith.constant dense<0.000000e+00> : vector<32x128xf32>
    %34 = tpu.matmul %32, %33, %cst_17 {dimension_numbers = #tpu.dot_dimension_numbers<[1], [0], [0], [1], [0, 0, 1, 1], [], []>} : vector<32x16xbf16>, vector<16x128xbf16>, vector<32x128xf32> -> vector<32x128xf32>
    %c0_18 = arith.constant 0 : index
    %c0_19 = arith.constant 0 : index
    %35 = vector.load %arg8[%c0_18, %c0_19] : memref<32x1xf32, #tpu.memory_space<vmem>>, vector<32x1xf32>
    %36 = vector.broadcast %35 : vector<32x1xf32> to vector<32x128xf32>
    %37 = arith.addf %34, %36 : vector<32x128xf32>
    %cst_20 = arith.constant dense<0xFF800000> : vector<128xf32>
    %38 = vector.multi_reduction <maximumf>, %37, %cst_20 [0] : vector<32x128xf32> to vector<128xf32>
    %39 = vector.shape_cast %38 : vector<128xf32> to vector<1x128xf32>
    %40 = vector.broadcast %39 : vector<1x128xf32> to vector<32x128xf32>
    %41 = arith.subf %37, %40 : vector<32x128xf32>
    %42 = math.exp %41 : vector<32x128xf32>
    %cst_21 = arith.constant dense<0.000000e+00> : vector<128xf32>
    %43 = vector.multi_reduction <add>, %42, %cst_21 [0] : vector<32x128xf32> to vector<128xf32>
    %44 = vector.shape_cast %43 : vector<128xf32> to vector<1x128xf32>
    %45 = tpu.reciprocal %44 {approx = true} : vector<1x128xf32> -> vector<1x128xf32>
    %46 = vector.broadcast %45 : vector<1x128xf32> to vector<32x128xf32>
    %47 = arith.mulf %42, %46 : vector<32x128xf32>
    %48 = arith.mulf %37, %47 : vector<32x128xf32>
    %49 = arith.mulf %48, %48 : vector<32x128xf32>
    %cst_22 = arith.constant dense<0.000000e+00> : vector<128xf32>
    %50 = vector.multi_reduction <add>, %49, %cst_22 [0] : vector<32x128xf32> to vector<128xf32>
    %51 = vector.shape_cast %50 : vector<128xf32> to vector<1x128xf32>
    %cst_23 = arith.constant 1.000000e-24 : f32
    %52 = vector.broadcast %cst_23 : f32 to vector<1x128xf32>
    %53 = arith.maximumf %51, %52 : vector<1x128xf32>
    %54 = math.rsqrt %53 : vector<1x128xf32>
    %c0_24 = arith.constant 0 : index
    %c0_25 = arith.constant 0 : index
    %55 = vector.load %arg9[%c0_24, %c0_25] : memref<32x1xf32, #tpu.memory_space<vmem>>, vector<32x1xf32>
    %56 = vector.broadcast %55 : vector<32x1xf32> to vector<32x128xf32>
    %57 = arith.mulf %48, %56 : vector<32x128xf32>
    %cst_26 = arith.constant dense<0.000000e+00> : vector<128xf32>
    %58 = vector.multi_reduction <add>, %57, %cst_26 [0] : vector<32x128xf32> to vector<128xf32>
    %59 = vector.shape_cast %58 : vector<128xf32> to vector<1x128xf32>
    %60 = arith.mulf %59, %54 : vector<1x128xf32>
    %cst_27 = arith.constant 0.000000e+00 : f32
    %cst_28 = arith.constant 1.000000e+00 : f32
    %61 = vector.broadcast %cst_27 : f32 to vector<1x128xf32>
    %62 = arith.maximumf %61, %60 : vector<1x128xf32>
    %63 = vector.broadcast %cst_28 : f32 to vector<1x128xf32>
    %64 = arith.minimumf %63, %62 : vector<1x128xf32>
    %65 = arith.truncf %48 : vector<32x128xf32> to vector<32x128xbf16>
    %66 = arith.truncf %64 : vector<1x128xf32> to vector<1x128xbf16>
    %67 = vector.broadcast %66 : vector<1x128xbf16> to vector<32x128xbf16>
    %68 = arith.mulf %65, %67 : vector<32x128xbf16>
    %c0_29 = arith.constant 0 : index
    %c0_30 = arith.constant 0 : index
    %69 = vector.load %arg10[%c0_29, %c0_30] : memref<32x32xbf16, #tpu.memory_space<vmem>>, vector<32x32xbf16>
    %cst_31 = arith.constant dense<0.000000e+00> : vector<32x128xf32>
    %70 = tpu.matmul %69, %68, %cst_31 {dimension_numbers = #tpu.dot_dimension_numbers<[1], [0], [0], [1], [0, 0, 1, 1], [], []>} : vector<32x32xbf16>, vector<32x128xbf16>, vector<32x128xf32> -> vector<32x128xf32>
    %71 = arith.truncf %70 : vector<32x128xf32> to vector<32x128xbf16>
    %c0_32 = arith.constant 0 : index
    %c0_33 = arith.constant 0 : index
    %c0_34 = arith.constant 0 : index
    %72 = vector.load %arg11[%c0_32, %c0_33, %c0_34] : memref<1x32x128xbf16, #tpu.memory_space<vmem>>, vector<1x32x128xbf16>
    %73 = vector.shape_cast %72 : vector<1x32x128xbf16> to vector<32x128xbf16>
    %74 = vector.shape_cast %71 : vector<32x128xbf16> to vector<1x32x128xbf16>
    tpu.vector_store %arg11[%c0_32, %c0_33, %c0_34], %74 {strides = array<i32>} : memref<1x32x128xbf16, #tpu.memory_space<vmem>>, vector<1x32x128xbf16>,
    return
  }
  func.func @transform_0(%arg0: i32, %arg1: i32) -> (i32, i32, i32) {
    %c0_i32 = arith.constant 0 : i32
    %c0_i32_0 = arith.constant 0 : i32
    return %arg0, %c0_i32, %arg1 : i32, i32, i32
  }
  func.func @transform_1(%arg0: i32, %arg1: i32) -> (i32, i32) {
    %c0_i32 = arith.constant 0 : i32
    %c0_i32_0 = arith.constant 0 : i32
    %c0_i32_1 = arith.constant 0 : i32
    return %c0_i32, %c0_i32_0 : i32, i32
  }
  func.func @transform_2(%arg0: i32, %arg1: i32) -> (i32, i32) {
    %c0_i32 = arith.constant 0 : i32
    %c0_i32_0 = arith.constant 0 : i32
    %c0_i32_1 = arith.constant 0 : i32
    return %c0_i32, %c0_i32_0 : i32, i32
  }
  func.func @transform_3(%arg0: i32, %arg1: i32) -> (i32, i32) {
    %c0_i32 = arith.constant 0 : i32
    %c0_i32_0 = arith.constant 0 : i32
    %c0_i32_1 = arith.constant 0 : i32
    return %c0_i32, %c0_i32_0 : i32, i32
  }
  func.func @transform_4(%arg0: i32, %arg1: i32) -> (i32, i32) {
    %c0_i32 = arith.constant 0 : i32
    %c0_i32_0 = arith.constant 0 : i32
    %c0_i32_1 = arith.constant 0 : i32
    return %c0_i32, %c0_i32_0 : i32, i32
  }
  func.func @transform_5(%arg0: i32, %arg1: i32) -> (i32, i32) {
    %c0_i32 = arith.constant 0 : i32
    %c0_i32_0 = arith.constant 0 : i32
    %c0_i32_1 = arith.constant 0 : i32
    return %c0_i32, %c0_i32_0 : i32, i32
  }
  func.func @transform_6(%arg0: i32, %arg1: i32) -> (i32, i32) {
    %c0_i32 = arith.constant 0 : i32
    %c0_i32_0 = arith.constant 0 : i32
    %c0_i32_1 = arith.constant 0 : i32
    return %c0_i32, %c0_i32_0 : i32, i32
  }
  func.func @transform_7(%arg0: i32, %arg1: i32) -> (i32, i32) {
    %c0_i32 = arith.constant 0 : i32
    %c0_i32_0 = arith.constant 0 : i32
    %c0_i32_1 = arith.constant 0 : i32
    return %c0_i32, %c0_i32_0 : i32, i32
  }
  func.func @transform_8(%arg0: i32, %arg1: i32) -> (i32, i32) {
    %c0_i32 = arith.constant 0 : i32
    %c0_i32_0 = arith.constant 0 : i32
    %c0_i32_1 = arith.constant 0 : i32
    return %c0_i32, %c0_i32_0 : i32, i32
  }
  func.func @transform_9(%arg0: i32, %arg1: i32) -> (i32, i32, i32) {
    %c0_i32 = arith.constant 0 : i32
    %c0_i32_0 = arith.constant 0 : i32
    return %arg0, %c0_i32, %arg1 : i32, i32, i32
  }
}

</mosaic_0001>

<bundles_post_ra>
// kernel: tpu_custom_call.1
= control target key start
LH: loop header
LB: loop body
LE: loop exit
PB: predicated region body
PF: predicated region fallthrough
CT: control target
= control target key end

     0   :  { %14 = vsyncpa [#allocation3], 0  ;;  %s1312_s0 = inlined_call_operand.vmem [shape: f32[2,4,128], index: 0, kind: input, shape index: {}]   ;;  %s1313_s1 = inlined_call_operand.vmem [shape: bf16[16,4], index: 1, kind: input, shape index: {}]   ;;  %s1314_s2 = inlined_call_operand.vmem [shape: f32[16,1], index: 2, kind: input, shape index: {}]   ;;  %s1315_s3 = inlined_call_operand.vmem [shape: f32[16,1], index: 3, kind: input, shape index: {}]   ;;  %s1316_s4 = inlined_call_operand.vmem [shape: f32[16,1], index: 4, kind: input, shape index: {}]   ;;  %s1317_s5 = inlined_call_operand.vmem [shape: bf16[32,16], index: 5, kind: input, shape index: {}]   ;;  %s1318_s6 = inlined_call_operand.vmem [shape: f32[32,1], index: 6, kind: input, shape index: {}]   ;;  %s1319_s7 = inlined_call_operand.vmem [shape: f32[32,1], index: 7, kind: input, shape index: {}]   ;;  %s1320_s8 = inlined_call_operand.vmem [shape: bf16[32,32], index: 8, kind: input, shape index: {}]   ;;  %s1321_s9 = inlined_call_operand.hbm [shape: bf16[2,32,128], index: 9, kind: output, shape index: {}]  }
   0x1   :  { %16 = vsyncpa [#allocation3 + $0x1], 0  ;;  %s1137_s30 = smov 0   ;;  %s1139_s10 = smov 0  }
   0x2   :  { %s1141_s11 = smov 0   ;;  %s1143_s12 = smov 0  }
   0x3   :  { %s1145_s13 = smov 0   ;;  %s1147_s14 = smov 0  }
   0x4 LB: > { %s851_s15 = sadd.s32 4294967295, %s1079_s14   ;;  %s852_s16 = sadd.s32 4294967294, %s1079_s14   ;;  %s1079_s14 = sphi %s1147_s14, %s22_s14   ;;  %s1075_s13 = sphi %s1145_s13, %s1331_s13   ;;  %s1071_s12 = sphi %s1143_s12, %s1330_s12   ;;  %s1067_s11 = sphi %s1141_s11, %s1329_s11   ;;  %s1063_s10 = sphi %s1139_s10, %s1328_s10   ;;  %s1059_s30 = sphi %s1137_s30, %s1327_s30  }
   0x5   : > { %s34_s17 = sadd.s32 1, %s1075_s13  ;;  %s239_s18 = sadd.s32 1, %s1067_s11 }
   0x6   : > { %p36_p0 = scmp.ge.s32.totalorder %s34_s17, 2  ;;  %p249_p1 = scmp.ne.s32.totalorder %s1067_s11, %s1063_s10 }
   0x7   : > { %p250_p2 = scmp.eq.s32.totalorder %s851_s15, 1  ;;  %p255_p3 = scmp.ne.s32.totalorder %s1063_s10, %s1059_s30 }
   0x8   : > { %s1333_s17 = smov (%p36_p0, %s34_s17), 0  ;;  %p256_p5 = scmp.eq.s32.totalorder %s852_s16, 1 }
   0x9   : > { %1323 = sst [smem:[#allocation5_spill]] %s1333_s17  ;;  %p1177_p4 = por %p250_p2, %p249_p1 }
   0xa   : > { %s234_s20 = ssub.s32 %s1075_s13, %s1333_s17  ;;  %p855_p6 = scmp.ge.s32.totalorder %s1079_s14, 1 }
   0xb   : > { %p237_p7 = scmp.eq.s32.totalorder %s234_s20, 0  ;;  %p1184_p8 = por %p256_p5, %p255_p3 }
   0xc   : > { %p308_p9 = scmp.lt.s32.totalorder %s1079_s14, 3 }
   0xd   : > { %s1190_s22 = scalar_select %p237_p7, %s1067_s11, %s239_s18  }
   0xe   : > { %p309_p10 = pnand %p855_p6, %p308_p9 }
   0xf   : > { %p346_p11 = scmp.lt.s32.totalorder (!%p309_p10), %s1071_s12, 1  ;;  %s343_s15 = sand.u32 (!%p309_p10), 1, %s1063_s10  }
  0x10   : > { %312 = sbr.rel (%p309_p10) target bundleno = 836 (0x344), region = 56  ;;  %s856_s16 = sshll.u32 (!%p309_p10), %s343_s15, 4 }
  0x11   : > { %s345_s17 = scalar_lea.vmem (!%p309_p10), [#allocation2], %s856_s16  ;;  %s1267_s27 = scalar_lea.sflag (!%p309_p10), [#allocation3], %s343_s15 }
  0x12   : > { %s776_s18 = sshll.u32 (!%p309_p10), %s345_s17, 4  ;;  %s1260_s18 = int_to_ptr.vmem [resolvable:$true] %s776_s18 }
  0x13   : > { %s1003_s28 = scalar_lea.vmem (!%p309_p10), %s1260_s18, 256 }
  0x14   : > { %p1004_p12 = scmp.ne.s32.totalorder (!%p309_p10), %s1260_s18, %s1003_s28 }
  0x15   : > { %v1081_v0 = vmov 0.0   ;;  %vm1082_vm0 = vmmov 0   ;;  %v358_v1 = vld [vmem:[%s1314_s2] sm:$0xff]  ;;  %s347_s25 = scalar_select %p346_p11, %s1071_s12, 1  ;;  %v1083_v2 = vmov 0   ;;  %v359_v3 = vld [vmem:[%s1314_s2 + $0x8] sm:$0xff] }
  0x16   : > { %902 = vmatprep.subr.bf16.mxu0 %v1081_v0  ;;  %904 = vmatprep.mubr.msk.bf16.mxu0 %vm1082_vm0, %v1081_v0  ;;  %v449_v4 = vld [vmem:[%s1315_s3] sm:$0xff]  ;;  %vm379_vm1 = vcmask 1041408   ;;  %v450_v7 = vld [vmem:[%s1315_s3 + $0x8] sm:$0xff]  ;;  %vm375_vm2 = vcmask 31744   ;;  %v484_v14 = vld [vmem:[%s1318_s6 + $0x10] sm:$0xff]  ;;  %vm516_vm3 = vcmask 130048   ;;  %p1005_p13 = pnand %p1004_p12, %p1177_p4 }
  0x17   : > { %982 = vset.pattern.permute.xlu0 %v1083_v2  ;;  %983 = vset.pattern.permute.xlu1 %v1083_v2  ;;  %s857_s26 = sshll.u32 %s347_s25, 2  ;;  %v463_v6 = vld [vmem:[%s1316_s4] sm:$0xff]  ;;  %v464_v11 = vld [vmem:[%s1316_s4 + $0x8] sm:$0xff]  ;;  %v485_v15 = vld [vmem:[%s1318_s6 + $0x18] sm:$0xff]  ;;  %vm685_vm4 = vcmask 261120  }
  0x18   : > { %362 = vperm.xlu0 %982, %v358_v1   ;;  %s352_s20 = scalar_lea.vmem %s1312_s0, %s857_s26  ;;  %453 = vperm.xlu1 %983, %v449_v4   ;;  %v984_v10 = vld [vmem:[%s1313_s1] sm:$0xff]   ;;  %v483_v13 = vld [vmem:[%s1318_s6 + $0x8] sm:$0xff]  ;;  %v628_v18 = vld [vmem:[%s1319_s7 + $0x10] sm:$0xff]  ;;  %p1006_p0 = pneg %p1005_p13 }
  0x19   : > { %v354_v5 = vld [vmem:[%s352_s20] sm:$0xf]  ;;  %v627_v17 = vld [vmem:[%s1319_s7 + $0x8] sm:$0xff]  ;;  %v629_v19 = vld [vmem:[%s1319_s7 + $0x18] sm:$0xff]  ;;  %s881_s20 = sshll.u32 %s1071_s12, 8  ;;  %s1084_s12 = smov [#allocation2]  }
  0x1a   : > { %v355_v8 = vpack.c.bf16 %v354_v5, %v354_v5  ;;  %v482_v12 = vld [vmem:[%s1318_s6] sm:$0xff]  ;;  %v986_v62 = vld [vmem:[%s1317_s5 + $0x8] sm:$0xff]   ;;  %s1265_s25 = scalar_lea.hbm %s1321_s9, %s881_s20  ;;  %s1007_s26 = sshll.u32 %s1084_s12, 4  ;;  %s1008_s26 = int_to_ptr.vmem [resolvable:$false] %s1007_s26 }
  0x1b   : > { %v626_v16 = vld [vmem:[%s1319_s7] sm:$0xff]  ;;  %s1009_s29 = scalar_lea.vmem %s1008_s26, 512  ;;  %p1010_p1 = scmp.lt.s32.totalorder %s1260_s18, %s1008_s26 }
  0x1c   : > { %367 = vperm.xlu0 %982, %v359_v3   ;;  %v381_v9 = vsel %vm379_vm1, %v355_v8, 0  ;;  %458 = vperm.xlu1 %983, %v450_v7   ;;  %v985_v20 = vld [vmem:[%s1317_s5] sm:$0xff]   ;;  %p1011_p2 = scmp.lt.s32.totalorder %s1009_s29, %s1003_s28 }
  0x1d   : > { %903 = vmatpush3.bf16.msra.mxu0 %v381_v9  ;;  %910 = vmatprep.mubr.msk.bf16.mxu1 %vm516_vm3, %v985_v20  ;;  %v987_v3 = vld [vmem:[%s1320_s8] sm:$0xff]  }
  0x1e   : > { %p1012_p3 = por %p1011_p2, %p1010_p1 }
  0x20   : > { %467 = vperm.xlu0 %982, %v463_v6   ;;  %905 = vmatmul.mubr.msk.bf16.vlgmr.msra.gmra.mxu0 %vm375_vm2, %v984_v10  ;;  %p1013_p5 = pnand %p1012_p3, %p1006_p0 }
  0x21   : > { %472 = vperm.xlu1 %983, %v464_v11   ;;  %918 = vmatprep.mubr.msk.bf16.mxu0 %vm685_vm4, %v987_v3 }
  0x24   : > { %488 = vperm.xlu0 %982, %v482_v12  }
  0x25   : > { %493 = vperm.xlu1 %983, %v483_v13  }
  0x28   : > { %498 = vperm.xlu0 %982, %v484_v14  }
  0x29   : > { %503 = vperm.xlu1 %983, %v485_v15  }
  0x2c   : > { %632 = vperm.xlu0 %982, %v626_v16  }
  0x2d   : > { %637 = vperm.xlu1 %983, %v627_v17  }
  0x30   : > { %642 = vperm.xlu0 %982, %v628_v18  }
  0x31   : > { %647 = vperm.xlu1 %983, %v629_v19  }
  0x93   : > { %v363_v21 = vpop.permute.xlu0 %362  ;;  %v454_v50 = vpop.permute.xlu1 %453 }
  0x97   : > { %v368_v24 = vpop.permute.xlu0 %367  ;;  %v459_v51 = vpop.permute.xlu1 %458 }
  0x9b   : > { %v468_v57 = vpop.permute.xlu0 %467 }
  0x9c   : > { %v473_v58 = vpop.permute.xlu1 %472 }
  0x9f   : > { %v489_v0 = vpop.permute.xlu0 %488 }
  0xa0   : > { %v494_v63 = vpop.permute.xlu1 %493 }
  0xa3   : > { %v499_v7 = vpop.permute.xlu0 %498 }
  0xa4   : > { %v504_v4 = vpop.permute.xlu1 %503 }
  0xe0   : > { %v417_v22 = vpop.f32.mrf.mxu0 }
  0xe1   : > { %v418_v26 = vadd.f32 %v417_v22, %v363_v21 }
  0xe2   : > { %v906_v23 = vpop.f32.mrf.mxu0 }
  0xe4   : > { %v420_v25 = vpop.f32.mrf.mxu0 }
  0xe5   : > { %v421_v27 = vadd.f32 %v420_v25, %v368_v24 }
  0xe6   : > { %v907_v28 = vpop.f32.mrf.mxu0 }
  0xe7   : > { %v424_v29 = vadd.f32 %v421_v27, %v418_v26 }
  0xe9   : > { %v425_v30 = vrot.slane %v424_v29, 4 }
  0xeb   : > { %v426_v31 = vadd.f32 %v425_v30, %v424_v29 }
  0xed   : > { %v427_v32 = vrot.slane %v426_v31, 2 }
  0xef   : > { %v428_v33 = vadd.f32 %v427_v32, %v426_v31 }
  0xf1   : > { %v429_v34 = vrot.slane %v428_v33, 1 }
  0xf3   : > { %v430_v35 = vadd.f32 %v429_v34, %v428_v33 }
  0xf5   : > { %v432_v36 = vmul.f32 0.0625, %v430_v35 }
  0xf7   : > { %v434_v37 = vsub.f32 %v421_v27, %v432_v36  ;;  %v433_v38 = vsub.f32 %v418_v26, %v432_v36 }
  0xf9   : > { %v436_v39 = vmul.f32 %v434_v37, %v434_v37  ;;  %v435_v40 = vmul.f32 %v433_v38, %v433_v38 }
  0xfb   : > { %v437_v41 = vadd.f32 %v436_v39, %v435_v40 }
  0xfd   : > { %v438_v42 = vrot.slane %v437_v41, 4 }
  0xff   : > { %v439_v43 = vadd.f32 %v438_v42, %v437_v41 }
 0x101   : > { %v440_v44 = vrot.slane %v439_v43, 2 }
 0x103   : > { %v441_v45 = vadd.f32 %v440_v44, %v439_v43 }
 0x105   : > { %v442_v46 = vrot.slane %v441_v45, 1 }
 0x107   : > { %v443_v47 = vadd.f32 %v442_v46, %v441_v45 }
 0x109   : > { %v444_v48 = vmul.f32 0.0625, %v443_v47  ;;  %v633_v47 = vpop.permute.xlu0 %632 }
 0x10b   : > { %v445_v49 = vadd.f32 1e-05, %v444_v48 }
 0x10d   : > { %989 = vrsqrt.f32 %v445_v49 }
 0x11a   : > { %v990_v52 = vpop.eup %989 }
 0x11b   : > { %v447_v53 = vmul.f32 %v990_v52, %v433_v38  ;;  %v448_v54 = vmul.f32 %v990_v52, %v434_v37 }
 0x11d   : > { %v461_v55 = vmul.f32 %v454_v50, %v447_v53  ;;  %v462_v56 = vmul.f32 %v459_v51, %v448_v54  ;;  %v638_v51 = vpop.permute.xlu1 %637 }
 0x11f   : > { %v475_v59 = vadd.f32 %v468_v57, %v461_v55  ;;  %v476_v60 = vadd.f32 %v473_v58, %v462_v56 }
 0x121   : > { %v481_v61 = vpack.c.bf16 %v476_v60, %v475_v59  ;;  %v643_v60 = vpop.permute.xlu0 %642 }
 0x123   : > { %908 = vmatprep.subr.bf16.mxu1 %v481_v61 }
 0x124   : > { %909 = vmatpush3.bf16.msra.mxu1 %v481_v61 }
 0x127   : > { %911 = vmatmul.mubr.msk.bf16.vlgmr.msra.gmra.mxu1 %vm516_vm3, %v986_v62 }
 0x1e7   : > { %v912_v1 = vpop.f32.mrf.mxu1 }
 0x1e8   : > { %v566_v9 = vadd.f32 %v912_v1, %v499_v7 }
 0x1e9   : > { %v557_v2 = vpop.f32.mrf.mxu1 }
 0x1ea   : > { %v558_v10 = vadd.f32 %v557_v2, %v489_v0  ;;  %v648_v2 = vpop.permute.xlu1 %647 }
 0x1eb   : > { %v913_v5 = vpop.f32.mrf.mxu1 }
 0x1ec   : > { %v569_v6 = vadd.f32 %v913_v5, %v504_v4 }
 0x1ed   : > { %v560_v8 = vpop.f32.mrf.mxu1 }
 0x1ee   : > { %v561_v11 = vadd.f32 %v560_v8, %v494_v63  ;;  %v573_v12 = vmax.f32 %v566_v9, %v569_v6 }
 0x1f0   : > { %v572_v13 = vmax.f32 %v558_v10, %v561_v11 }
 0x1f2   : > { %v574_v14 = vmax.f32 %v572_v13, %v573_v12 }
 0x1f4   : > { %v575_v15 = vrot.slane %v574_v14, 4 }
 0x1f6   : > { %v576_v16 = vmax.f32 %v574_v14, %v575_v15 }
 0x1f8   : > { %v577_v17 = vrot.slane %v576_v16, 2 }
 0x1fa   : > { %v578_v18 = vmax.f32 %v576_v16, %v577_v17 }
 0x1fc   : > { %v579_v19 = vrot.slane %v578_v18, 1 }
 0x1fe   : > { %v580_v20 = vmax.f32 %v578_v18, %v579_v19 }
 0x200   : > { %v581_v21 = vsub.f32 %v558_v10, %v580_v20  ;;  %v582_v22 = vsub.f32 %v561_v11, %v580_v20  ;;  %v583_v23 = vsub.f32 %v566_v9, %v580_v20  ;;  %v584_v24 = vsub.f32 %v569_v6, %v580_v20 }
 0x202   : > { %v585_v25 = vmul.f32 1.442695, %v581_v21  ;;  %v587_v26 = vmul.f32 1.442695, %v582_v22  ;;  %v589_v27 = vmul.f32 1.442695, %v583_v23 }
 0x203   : > { %v591_v28 = vmul.f32 1.442695, %v584_v24 }
 0x204   : > { %991 = vpow2.f32 %v585_v25 }
 0x205   : > { %993 = vpow2.f32 %v587_v26 }
 0x206   : > { %995 = vpow2.f32 %v589_v27  ;;  %v988_v27 = vld [vmem:[%s1320_s8 + $0x8] sm:$0xff]  }
 0x207   : > { %997 = vpow2.f32 %v591_v28 }
 0x211   : > { %v992_v29 = vpop.eup %991 }
 0x212   : > { %v994_v30 = vpop.eup %993 }
 0x213   : > { %v593_v31 = vadd.f32 %v994_v30, %v992_v29  ;;  %v996_v32 = vpop.eup %995 }
 0x214   : > { %v998_v34 = vpop.eup %997 }
 0x215   : > { %v594_v33 = vadd.f32 %v996_v32, %v593_v31 }
 0x217   : > { %v595_v35 = vadd.f32 %v998_v34, %v594_v33 }
 0x219   : > { %v596_v36 = vrot.slane %v595_v35, 4 }
 0x21b   : > { %v597_v37 = vadd.f32 %v596_v36, %v595_v35 }
 0x21d   : > { %v598_v38 = vrot.slane %v597_v37, 2 }
 0x21f   : > { %v599_v39 = vadd.f32 %v598_v38, %v597_v37 }
 0x221   : > { %v600_v40 = vrot.slane %v599_v39, 1 }
 0x223   : > { %v601_v41 = vadd.f32 %v600_v40, %v599_v39 }
 0x225   : > { %999 = vrcp.f32 %v601_v41 }
 0x232   : > { %v1000_v42 = vpop.eup %999 }
 0x233   : > { %v603_v43 = vmul.f32 %v1000_v42, %v992_v29  ;;  %v604_v44 = vmul.f32 %v1000_v42, %v994_v30  ;;  %v605_v45 = vmul.f32 %v1000_v42, %v996_v32  ;;  %v606_v46 = vmul.f32 %v1000_v42, %v998_v34 }
 0x235   : > { %v607_v48 = vmul.f32 %v603_v43, %v558_v10  ;;  %v608_v49 = vmul.f32 %v604_v44, %v561_v11  ;;  %v609_v50 = vmul.f32 %v605_v45, %v566_v9  ;;  %v610_v52 = vmul.f32 %v606_v46, %v569_v6 }
 0x237   : > { %v611_v53 = vmul.f32 %v607_v48, %v607_v48  ;;  %v612_v54 = vmul.f32 %v608_v49, %v608_v49  ;;  %v650_v55 = vmul.f32 %v633_v47, %v607_v48  ;;  %v651_v56 = vmul.f32 %v638_v51, %v608_v49 }
 0x238   : > { %v613_v59 = vmul.f32 %v609_v50, %v609_v50  ;;  %v614_v61 = vmul.f32 %v610_v52, %v610_v52  ;;  %v652_v63 = vmul.f32 %v643_v60, %v609_v50  ;;  %v653_v4 = vmul.f32 %v648_v2, %v610_v52 }
 0x239   : > { %v615_v57 = vadd.f32 %v612_v54, %v611_v53  ;;  %v654_v58 = vadd.f32 %v651_v56, %v650_v55  ;;  %v667_v22 = vpack.c.bf16 %v610_v52, %v609_v50  ;;  %v666_v25 = vpack.c.bf16 %v608_v49, %v607_v48 }
 0x23b   : > { %v616_v62 = vadd.f32 %v615_v57, %v613_v59  ;;  %v655_v1 = vadd.f32 %v654_v58, %v652_v63 }
 0x23d   : > { %v617_v0 = vadd.f32 %v616_v62, %v614_v61  ;;  %v656_v7 = vadd.f32 %v655_v1, %v653_v4 }
 0x23f   : > { %v618_v3 = vrot.slane %v617_v0, 4  ;;  %v657_v9 = vrot.slane %v656_v7, 4 }
 0x241   : > { %v619_v5 = vadd.f32 %v618_v3, %v617_v0  ;;  %v658_v12 = vadd.f32 %v657_v9, %v656_v7 }
 0x243   : > { %v620_v8 = vrot.slane %v619_v5, 2  ;;  %v659_v14 = vrot.slane %v658_v12, 2 }
 0x245   : > { %v621_v6 = vadd.f32 %v620_v8, %v619_v5  ;;  %v660_v15 = vadd.f32 %v659_v14, %v658_v12 }
 0x247   : > { %v622_v10 = vrot.slane %v621_v6, 1  ;;  %v661_v16 = vrot.slane %v660_v15, 1 }
 0x249   : > { %v623_v11 = vadd.f32 %v622_v10, %v621_v6  ;;  %v662_v17 = vadd.f32 %v661_v16, %v660_v15 }
 0x24b   : > { %v624_v13 = vmax.f32 %v623_v11, 1e-24 }
 0x24d   : > { %1001 = vrsqrt.f32 %v624_v13 }
 0x25a   : > { %v1002_v18 = vpop.eup %1001 }
 0x25b   : > { %v663_v19 = vmul.f32 %v1002_v18, %v662_v17 }
 0x25d   : > { %v664_v20 = vmax.f32 %v663_v19, 0.0 }
 0x25f   : > { %v665_v21 = vmin.f32 %v664_v20, 1.0 }
 0x261   : > { %v668_v23 = vpack.c.bf16 %v665_v21, %v665_v21 }
 0x263   : > { %v670_v24 = vmul.bf16 %v668_v23, %v667_v22  ;;  %v669_v26 = vmul.bf16 %v668_v23, %v666_v25 }
 0x265   : > { %914 = vmatprep.subr.bf16.mxu0 %v670_v24 }
 0x266   : > { %915 = vmatpush3.bf16.msra.mxu0 %v670_v24 }
 0x267   : > { %916 = vmatprep.subr.bf16.mxu0 %v669_v26 }
 0x26a   : > { %917 = vmatpush3.bf16.msra.mxu0 %v669_v26 }
 0x26d   : > { %919 = vmatmul.mubr.msk.bf16.vlgmr.msra.gmra.mxu0 %vm685_vm4, %v988_v27 }
 0x32d   : > { %v920_v28 = vpop.f32.mrf.mxu0 }
 0x32f   : > { %v726_v29 = vpop.f32.mrf.mxu0 }
 0x331   : > { %v921_v30 = vpop.f32.mrf.mxu0 }
 0x332   : > { %v890_v31 = vpack.c.bf16 %v921_v30, %v920_v28 }
 0x333   : > { %v729_v32 = vpop.f32.mrf.mxu0 }
 0x334   : > { %892 = vst [vmem:[%s345_s17 + $0x8] sm:$0xff] %v890_v31   ;;  %v885_v33 = vpack.c.bf16 %v729_v32, %v726_v29 }
 0x336   : > { %886 = vst [vmem:[%s345_s17] sm:$0xff] %v885_v33  }
 0x337   : > { %1016 = shalt.err (!%p1013_p5)
}
 0x338   : > { %s1017_s15 = scalar_lea.hbm %s1265_s25, 256  ;;  %s1021_s20 = scalar_lea.hbm %s1321_s9, 512 }
 0x339   : > { %p1018_p6 = scmp.ne.s32.totalorder %s1265_s25, %s1017_s15  ;;  %p1022_p10 = scmp.lt.s32.totalorder %s1265_s25, %s1321_s9 }
 0x33a   : > { %p1023_p11 = scmp.lt.s32.totalorder %s1021_s20, %s1017_s15 }
 0x33b   : > { %p1019_p7 = pnand %p1018_p6, %p1177_p4 }
 0x33c   : > { %p1024_p12 = por %p1023_p11, %p1022_p10 }
 0x33d   : > { %p1020_p9 = pneg %p1019_p7 }
 0x33f   : > { %p1025_p13 = pnand %p1024_p12, %p1020_p9 }
 0x341   : > { %1028 = shalt.err (!%p1025_p13)
}
 0x342   : > { %s1085_s28 = smov 64   ;;  %s1086_s12 = smov 4  }
 0x343   : > { %922 = dma.vmem_to_hbm [thread:$0]  (%p1177_p4), %s1260_s18, 256, %s1265_s25, %s1267_s27, %s1085_s28, %s1085_s28, %s1086_s12  }
 0x344 PF: > { %p928_p0 = scmp.ge.s32.totalorder %s1079_s14, 2  ;;  %s791_s26 = sand.u32 1, %s1059_s30  }
 0x345   : > { %s792_s29 = scalar_lea.sflag [#allocation3], %s791_s26 }
 0x346   : > { %p925_p1 = pnand %p928_p0, %p1184_p8 }
 0x348   : > { %p926_p2 = pneg %p925_p1 }
 0x34a   : > { %1054 = dma.done.wait (%p926_p2), %s792_s29, 256  }
 0x34b   : > { %1056 = vsyncadd (%p926_p2), %s792_s29, 4294967040  ;;  %s22_s14 = sadd.s32 1, %s1079_s14   ;;  %s1326_s19 = sld [smem:[#allocation5_spill]] }
 0x34c   : > { %p19_p3 = scmp.ge.s32.totalorder %s22_s14, 4   ;;  %s1327_s30 = smov %s1063_s10 }
 0x34d   : > { %s1328_s10 = smov %s1067_s11  ;;  %s1329_s11 = smov %s1190_s22 }
 0x34e   : > { %s1330_s12 = smov %s1075_s13  ;;  %21 = sbr.rel (!%p19_p3) target bundleno = 4 (0x4), region = 91 }
 0x351   : > { %s1331_s13 = smov %s1326_s19 }
 0x353   :  { %797 = vsyncpa [#allocation3], 1 }
 0x354   :  { %799 = vsyncpa [#allocation3 + $0x1], 1 }

</bundles_post_ra>
